<compile_context>
chip_gen: v7x
topology: tpu7x:2x2x1
jax: 0.10.0
libtpu: 0.0.40
codegen_flags: <defaults>
</compile_context>

<pallas_src>
import math
from functools import partial

import jax
import jax.numpy as jnp
from jax.experimental import pallas as pl
from jax.experimental.pallas import tpu as pltpu


def _attn_join_kernel(x_ref, wscore_ref, wvT_ref, expand_ref, wpT_ref, bp_ref,
                      out_ref, *, num_heads):
    TB, N, D = x_ref.shape
    H = num_heads

    xf = x_ref[...].reshape(TB * N, D)          # flatten batch block for MXU

    # Scores for every head at once.  wscore already folds Wq, Wk, the cls
    # query and the 1/sqrt(head_dim) scale.
    s = jnp.dot(xf, wscore_ref[...],
                preferred_element_type=jnp.float32).reshape(TB, N, H)

    # Softmax over the key axis (N), independently per batch element / head.
    # Elementwise math stays in f32 (v5e VPU/EUP have no bf16).
    m = jnp.max(s, axis=1, keepdims=True)                   # (TB, 1, H)
    e = jnp.exp(s - m)                                      # (TB, N, H)
    denom = jnp.sum(e, axis=1, keepdims=True)               # (TB, 1, H)
    a = e * pl.reciprocal(denom, approx=True)               # (TB, N, H)

    # v projection for the whole batch block (single MXU matmul).
    v = jnp.dot(xf, wvT_ref[...], preferred_element_type=jnp.float32)  # (TB*N, D)

    # Broadcast each head's attention weight across its head_dim lanes with a
    # 0/1 matmul (keeps D in lanes; no per-head slicing / XLU shuffles).
    a_dense = jnp.dot(a.reshape(TB * N, H), expand_ref[...],
                      preferred_element_type=jnp.float32)               # (TB*N, D)

    # Attention-weighted sum over keys -> (TB, D).
    o = jnp.sum((a_dense * v).reshape(TB, N, D), axis=1)

    # Output projection + bias as one full-width matmul.
    fx = jnp.dot(o.astype(wpT_ref.dtype), wpT_ref[...],
                 preferred_element_type=jnp.float32) + bp_ref[...]
    out_ref[...] = fx.astype(out_ref.dtype)


def _pick_block_b(B, N):
    """Batch-block size: aim for TB*N >= ~256 flattened matmul rows while
    keeping the (TB, D) output block legal (TB multiple of 8, or TB == B)."""
    want = max(8, pl.cdiv(256, max(N, 1)))
    if want >= B:
        return B
    tb = (want // 8) * 8
    while tb >= 8:
        if B % tb == 0:
            return tb
        tb -= 8
    return B


def attentional_join(x, params, *, num_heads, matmul_dtype=jnp.float32,
                     block_b=None):
    """x: (B, N, D) float32 -> (B, D) float32."""
    B, N, D = x.shape
    H = num_heads
    hd = D // H
    scale = hd ** (-0.5)
    cls_tok, wqT, wkT, wvT, wpT, bp = params

    # --- batch-independent precompute (wrapper side) -------------------------
    # Fold cls-query, scale and Wk into one (D, H) score matrix so the per-batch
    # score path is a single x @ wscore matmul; Wq/Wk never enter VMEM.
    q_scaled = (cls_tok @ wqT) * scale                         # (1, D)
    wscore = jnp.einsum('dhk,hk->dh',
                        wkT.reshape(D, H, hd),
                        q_scaled.reshape(H, hd))               # (D, H)

    # 0/1 matrix repeating each head's weight across its hd lanes.
    expand = jnp.repeat(jnp.eye(H, dtype=jnp.float32), hd, axis=1)   # (H, D)

    x_mm = x.astype(matmul_dtype)
    wscore_mm = wscore.astype(matmul_dtype)
    wvT_mm = wvT.astype(matmul_dtype)
    wpT_mm = wpT.astype(matmul_dtype)
    bp_f32 = bp.astype(jnp.float32)

    TB = block_b or _pick_block_b(B, N)
    assert B % TB == 0, (B, TB)
    grid = (B // TB,)

    # NOTE: for large D, prefer bf16 weights / smaller TB (v7x has 64 MiB VMEM);
    # raise vmem_limit_bytes via pltpu.CompilerParams only if still needed.
    return pl.pallas_call(
        partial(_attn_join_kernel, num_heads=H),
        out_shape=jax.ShapeDtypeStruct((B, D), jnp.float32),
        grid=grid,
        in_specs=[
            pl.BlockSpec((TB, N, D), lambda b: (b, 0, 0)),   # x batch block
            pl.BlockSpec((D, H), lambda b: (0, 0)),          # folded q/Wk scores
            pl.BlockSpec((D, D), lambda b: (0, 0)),          # Wv^T
            pl.BlockSpec((H, D), lambda b: (0, 0)),          # head -> lane expand
            pl.BlockSpec((D, D), lambda b: (0, 0)),          # Wproj^T
            pl.BlockSpec((1, D), lambda b: (0, 0)),          # proj bias
        ],
        out_specs=pl.BlockSpec((TB, D), lambda b: (b, 0)),   # lane-dense (B, D)
        compiler_params=pltpu.CompilerParams(
            dimension_semantics=("parallel",)),              # megacore on v7x
    )(x_mm, wscore_mm, wvT_mm, expand, wpT_mm, bp_f32)


def _reference(x, params, *, num_heads):
    """Pure-JAX reference mirroring the torch forward exactly."""
    cls_tok, wqT, wkT, wvT, wpT, bp = params
    B, N, D = x.shape
    hd = D // num_heads
    scale = hd ** (-0.5)
    q = jnp.broadcast_to(cls_tok[None], (B, 1, D)) @ wqT            # (B,1,D)
    k = x @ wkT                                                     # (B,N,D)
    v = x @ wvT
    qh = q.reshape(B, 1, num_heads, hd).transpose(0, 2, 1, 3)       # (B,H,1,hd)
    kh = k.reshape(B, N, num_heads, hd).transpose(0, 2, 1, 3)       # (B,H,N,hd)
    vh = v.reshape(B, N, num_heads, hd).transpose(0, 2, 1, 3)
    attn = jnp.einsum('bhmd,bhnd->bhmn', qh, kh) * scale
    attn = jax.nn.softmax(attn, axis=-1)
    o = jnp.einsum('bhmn,bhnd->bhmd', attn, vh)                     # (B,H,1,hd)
    o = o.transpose(0, 2, 1, 3).reshape(B, 1, D)
    fx = o @ wpT + bp                                               # (B,1,D)
    return fx[:, 0, :]


def init_params(key, D):
    """Deterministic synthetic params.  Torch shapes:
       q_w.weight (D,D), kv_w.weight (2D,D), proj.weight (D,D), proj.bias (D,),
       cls (1,1,D).  Projection weights are stored pre-transposed to (in, out).
       NOTE: torch inits cls to zeros; small randoms are used so the numerics
       are non-trivial (deterministic either way)."""
    ks = jax.random.split(key, 5)
    bound = 1.0 / math.sqrt(D)
    wq = jax.random.uniform(ks[0], (D, D), jnp.float32, -bound, bound)     # (out,in)
    wkv = jax.random.uniform(ks[1], (2 * D, D), jnp.float32, -bound, bound)
    wp = jax.random.uniform(ks[2], (D, D), jnp.float32, -bound, bound)
    bpv = jax.random.uniform(ks[3], (D,), jnp.float32, -bound, bound)
    cls_tok = 0.02 * jax.random.normal(ks[4], (1, D), jnp.float32)
    wk, wv = wkv[:D], wkv[D:]
    return (cls_tok, wq.T, wk.T, wv.T, wp.T, bpv.reshape(1, D))


if __name__ == "__main__":
    B, N, D, H = 2, 8, 32, 8
    key = jax.random.PRNGKey(0)
    kx, kp = jax.random.split(key)
    x = jax.random.normal(kx, (B, N, D), jnp.float32)
    params = init_params(kp, D)

    ref = _reference(x, params, num_heads=H)

    # f32 matmul operands (tolerance accounts for the EUP approx reciprocal).
    out = jax.jit(partial(attentional_join, num_heads=H))(x, params)
    out = jax.block_until_ready(out)
    assert out.shape == (B, D), out.shape
    err = float(jnp.max(jnp.abs(out - ref)))
    assert err < 2e-2, err

    # bf16 matmul operands with f32 accumulation (halves HBM/VMEM traffic,
    # doubles MXU throughput); looser tolerance.
    out_bf16 = jax.jit(partial(attentional_join, num_heads=H,
                               matmul_dtype=jnp.bfloat16))(x, params)
    out_bf16 = jax.block_until_ready(out_bf16)
    err_bf16 = float(jnp.max(jnp.abs(out_bf16 - ref)))
    assert err_bf16 < 5e-2, err_bf16

    print("KERNEL_OK")
</pallas_src>

<mosaic_0001>
module attributes {stable_mosaic.version = 11 : i64} {
  func.func @_attn_join_kernel(%arg0: i32, %arg1: memref<2x8x32xf32, #tpu.memory_space<vmem>>, %arg2: memref<32x8xf32, #tpu.memory_space<vmem>>, %arg3: memref<32x32xf32, #tpu.memory_space<vmem>>, %arg4: memref<8x32xf32, #tpu.memory_space<vmem>>, %arg5: memref<32x32xf32, #tpu.memory_space<vmem>>, %arg6: memref<1x32xf32, #tpu.memory_space<vmem>>, %arg7: memref<2x32xf32, #tpu.memory_space<vmem>>) attributes {dimension_semantics = [#tpu.dimension_semantics<parallel>], iteration_bounds = array<i64: 1>, scalar_prefetch = 0 : i64, scratch_operands = 0 : i64, tpu.core_type = #tpu.core_type<tc>, window_params = [{transform_indices = @transform_0, window_bounds = array<i64: 2, 8, 32>}, {pipeline_mode = #tpu.pipeline_mode<synchronous>, transform_indices = @transform_1, window_bounds = array<i64: 32, 8>}, {pipeline_mode = #tpu.pipeline_mode<synchronous>, transform_indices = @transform_2, window_bounds = array<i64: 32, 32>}, {pipeline_mode = #tpu.pipeline_mode<synchronous>, transform_indices = @transform_3, window_bounds = array<i64: 8, 32>}, {pipeline_mode = #tpu.pipeline_mode<synchronous>, transform_indices = @transform_4, window_bounds = array<i64: 32, 32>}, {pipeline_mode = #tpu.pipeline_mode<synchronous>, transform_indices = @transform_5, window_bounds = array<i64: 1, 32>}, {transform_indices = @transform_6, window_bounds = array<i64: 2, 32>}]} {
    %c0 = arith.constant 0 : index
    %c0_0 = arith.constant 0 : index
    %c0_1 = arith.constant 0 : index
    %0 = vector.load %arg1[%c0, %c0_0, %c0_1] : memref<2x8x32xf32, #tpu.memory_space<vmem>>, vector<2x8x32xf32>
    %1 = vector.shape_cast %0 : vector<2x8x32xf32> to vector<16x32xf32>
    %c0_2 = arith.constant 0 : index
    %c0_3 = arith.constant 0 : index
    %2 = vector.load %arg2[%c0_2, %c0_3] : memref<32x8xf32, #tpu.memory_space<vmem>>, vector<32x8xf32>
    %cst = arith.constant dense<0.000000e+00> : vector<16x8xf32>
    %3 = tpu.matmul %1, %2, %cst {dimension_numbers = #tpu.dot_dimension_numbers<[1], [0], [0], [1], [0, 0, 1, 1], [], []>} : vector<16x32xf32>, vector<32x8xf32>, vector<16x8xf32> -> vector<16x8xf32>
    %4 = vector.shape_cast %3 : vector<16x8xf32> to vector<2x8x8xf32>
    %cst_4 = arith.constant dense<0xFF800000> : vector<2x8xf32>
    %5 = vector.multi_reduction <maximumf>, %4, %cst_4 [1] : vector<2x8x8xf32> to vector<2x8xf32>
    %6 = vector.shape_cast %5 : vector<2x8xf32> to vector<2x1x8xf32>
    %7 = vector.broadcast %6 : vector<2x1x8xf32> to vector<2x8x8xf32>
    %8 = arith.subf %4, %7 : vector<2x8x8xf32>
    %9 = math.exp %8 : vector<2x8x8xf32>
    %cst_5 = arith.constant dense<0.000000e+00> : vector<2x8xf32>
    %10 = vector.multi_reduction <add>, %9, %cst_5 [1] : vector<2x8x8xf32> to vector<2x8xf32>
    %11 = vector.shape_cast %10 : vector<2x8xf32> to vector<2x1x8xf32>
    %12 = tpu.reciprocal %11 {approx = true} : vector<2x1x8xf32> -> vector<2x1x8xf32>
    %13 = vector.broadcast %12 : vector<2x1x8xf32> to vector<2x8x8xf32>
    %14 = arith.mulf %9, %13 : vector<2x8x8xf32>
    %c0_6 = arith.constant 0 : index
    %c0_7 = arith.constant 0 : index
    %15 = vector.load %arg3[%c0_6, %c0_7] : memref<32x32xf32, #tpu.memory_space<vmem>>, vector<32x32xf32>
    %cst_8 = arith.constant dense<0.000000e+00> : vector<16x32xf32>
    %16 = tpu.matmul %1, %15, %cst_8 {dimension_numbers = #tpu.dot_dimension_numbers<[1], [0], [0], [1], [0, 0, 1, 1], [], []>} : vector<16x32xf32>, vector<32x32xf32>, vector<16x32xf32> -> vector<16x32xf32>
    %17 = vector.shape_cast %14 : vector<2x8x8xf32> to vector<16x8xf32>
    %c0_9 = arith.constant 0 : index
    %c0_10 = arith.constant 0 : index
    %18 = vector.load %arg4[%c0_9, %c0_10] : memref<8x32xf32, #tpu.memory_space<vmem>>, vector<8x32xf32>
    %cst_11 = arith.constant dense<0.000000e+00> : vector<16x32xf32>
    %19 = tpu.matmul %17, %18, %cst_11 {dimension_numbers = #tpu.dot_dimension_numbers<[1], [0], [0], [1], [0, 0, 1, 1], [], []>} : vector<16x8xf32>, vector<8x32xf32>, vector<16x32xf32> -> vector<16x32xf32>
    %20 = arith.mulf %19, %16 : vector<16x32xf32>
    %21 = vector.shape_cast %20 : vector<16x32xf32> to vector<2x8x32xf32>
    %cst_12 = arith.constant dense<0.000000e+00> : vector<2x32xf32>
    %22 = vector.multi_reduction <add>, %21, %cst_12 [1] : vector<2x8x32xf32> to vector<2x32xf32>
    %c0_13 = arith.constant 0 : index
    %c0_14 = arith.constant 0 : index
    %23 = vector.load %arg5[%c0_13, %c0_14] : memref<32x32xf32, #tpu.memory_space<vmem>>, vector<32x32xf32>
    %cst_15 = arith.constant dense<0.000000e+00> : vector<2x32xf32>
    %24 = tpu.matmul %22, %23, %cst_15 {dimension_numbers = #tpu.dot_dimension_numbers<[1], [0], [0], [1], [0, 0, 1, 1], [], []>} : vector<2x32xf32>, vector<32x32xf32>, vector<2x32xf32> -> vector<2x32xf32>
    %c0_16 = arith.constant 0 : index
    %c0_17 = arith.constant 0 : index
    %25 = vector.load %arg6[%c0_16, %c0_17] : memref<1x32xf32, #tpu.memory_space<vmem>>, vector<1x32xf32>
    %26 = vector.broadcast %25 : vector<1x32xf32> to vector<2x32xf32>
    %27 = arith.addf %24, %26 : vector<2x32xf32>
    %c0_18 = arith.constant 0 : index
    %c0_19 = arith.constant 0 : index
    %28 = vector.load %arg7[%c0_18, %c0_19] : memref<2x32xf32, #tpu.memory_space<vmem>>, vector<2x32xf32>
    tpu.vector_store %arg7[%c0_18, %c0_19], %27 {strides = array<i32>} : memref<2x32xf32, #tpu.memory_space<vmem>>, vector<2x32xf32>,
    return
  }
  func.func @transform_0(%arg0: i32) -> (i32, i32, i32) {
    %c0_i32 = arith.constant 0 : i32
    %c0_i32_0 = arith.constant 0 : i32
    %c0_i32_1 = arith.constant 0 : i32
    return %arg0, %c0_i32, %c0_i32_0 : i32, i32, i32
  }
  func.func @transform_1(%arg0: i32) -> (i32, i32) {
    %c0_i32 = arith.constant 0 : i32
    %c0_i32_0 = arith.constant 0 : i32
    %c0_i32_1 = arith.constant 0 : i32
    return %c0_i32, %c0_i32_0 : i32, i32
  }
  func.func @transform_2(%arg0: i32) -> (i32, i32) {
    %c0_i32 = arith.constant 0 : i32
    %c0_i32_0 = arith.constant 0 : i32
    %c0_i32_1 = arith.constant 0 : i32
    return %c0_i32, %c0_i32_0 : i32, i32
  }
  func.func @transform_3(%arg0: i32) -> (i32, i32) {
    %c0_i32 = arith.constant 0 : i32
    %c0_i32_0 = arith.constant 0 : i32
    %c0_i32_1 = arith.constant 0 : i32
    return %c0_i32, %c0_i32_0 : i32, i32
  }
  func.func @transform_4(%arg0: i32) -> (i32, i32) {
    %c0_i32 = arith.constant 0 : i32
    %c0_i32_0 = arith.constant 0 : i32
    %c0_i32_1 = arith.constant 0 : i32
    return %c0_i32, %c0_i32_0 : i32, i32
  }
  func.func @transform_5(%arg0: i32) -> (i32, i32) {
    %c0_i32 = arith.constant 0 : i32
    %c0_i32_0 = arith.constant 0 : i32
    %c0_i32_1 = arith.constant 0 : i32
    return %c0_i32, %c0_i32_0 : i32, i32
  }
  func.func @transform_6(%arg0: i32) -> (i32, i32) {
    %c0_i32 = arith.constant 0 : i32
    %c0_i32_0 = arith.constant 0 : i32
    return %arg0, %c0_i32 : i32, i32
  }
}

</mosaic_0001>

<bundles_post_ra>
// kernel: attentional_join.1
= control target key start
LH: loop header
LB: loop body
LE: loop exit
PB: predicated region body
PF: predicated region fallthrough
CT: control target
= control target key end

     0   :  { %vm30_vm0 = vcmask 261120   ;;  %s667_s0 = inlined_call_operand.vmem [shape: f32[2,8,32], index: 0, kind: input, shape index: {}]   ;;  %s668_s1 = inlined_call_operand.vmem [shape: f32[32,8], index: 1, kind: input, shape index: {}]   ;;  %s669_s2 = inlined_call_operand.vmem [shape: f32[32,32], index: 2, kind: input, shape index: {}]   ;;  %s670_s3 = inlined_call_operand.vmem [shape: f32[8,32], index: 3, kind: input, shape index: {}]   ;;  %s671_s4 = inlined_call_operand.vmem [shape: f32[32,32], index: 4, kind: input, shape index: {}]   ;;  %s672_s5 = inlined_call_operand.vmem [shape: f32[1,32], index: 5, kind: input, shape index: {}]   ;;  %s673_s6 = inlined_call_operand.hbm [shape: f32[2,32], index: 6, kind: output, shape index: {}]  }
   0x1   :  { %v26_v0 = vld [vmem:[%s668_s1] sm:$0xff]  ;;  %v27_v1 = vld [vmem:[%s668_s1 + $0x8] sm:$0xff]  ;;  %v28_v2 = vld [vmem:[%s668_s1 + $0x10] sm:$0xff] }
   0x2   :  { %v497_v3 = vpack.c.bf16 %v27_v1, %v26_v0  ;;  %v29_v4 = vld [vmem:[%s668_s1 + $0x18] sm:$0xff]  ;;  %v24_v5 = vld [vmem:[%s667_s0] sm:$0xff] }
   0x3   :  { %v501_v6 = vpack.c.bf16 %v29_v4, %v28_v2  ;;  %467 = vmatprep.mubr.msk.f32.mxu0 %vm30_vm0, %v24_v5  ;;  %478 = vmatprep.mubr.msk.f32.mxu1 %vm30_vm0, %v24_v5 }
   0x4   :  { %11 = vsyncpa [#allocation3], 0  ;;  %498 = vmatprep.subr.bf16.mxu0 %v497_v3  ;;  %v25_v7 = vld [vmem:[%s667_s0 + $0x8] sm:$0xff]  ;;  %v151_v8 = vld [vmem:[%s669_s2] sm:$0xff]  ;;  %vm112_vm1 = vcmask 64512   ;;  %v555_v60 = vmov 0.0|0.0  }
   0x5   :  { %500 = vmatpush3.bf16.msra.mxu0 %v497_v3  ;;  %v152_v9 = vld [vmem:[%s669_s2 + $0x8] sm:$0xff]  ;;  %v153_v10 = vld [vmem:[%s669_s2 + $0x10] sm:$0xff]  ;;  %v154_v12 = vld [vmem:[%s669_s2 + $0x18] sm:$0xff]  ;;  %vm556_vm2 = vmmov 0   ;;  %v557_v0 = vmov 0.0   ;;  %vm341_vm3 = vcmask 1041409  }
   0x6   :  { %502 = vmatprep.subr.bf16.mxu0 %v501_v6  ;;  %v505_v11 = vpack.c.bf16 %v152_v9, %v151_v8  ;;  %v230_v13 = vld [vmem:[%s670_s3] sm:$0xff]  ;;  %v509_v14 = vpack.c.bf16 %v154_v12, %v153_v10  ;;  %v329_v58 = vld [vmem:[%s671_s4 + $0x8] sm:$0xff]  ;;  %v330_v61 = vld [vmem:[%s671_s4 + $0x10] sm:$0xff]  ;;  %s558_s24 = smov [#allocation2]   ;;  %vm415_vm4 = vcmask 254976  }
   0x7   :  { %v328_v57 = vld [vmem:[%s671_s4] sm:$0xff]  ;;  %v331_v62 = vld [vmem:[%s671_s4 + $0x18] sm:$0xff]  ;;  %s423_s25 = sshll.u32 %s558_s24, 4  ;;  %s424_s25 = int_to_ptr.vmem [resolvable:$true] %s423_s25 }
   0x8   :  { %506 = vmatprep.subr.bf16.mxu1 %v505_v11  ;;  %v514_v59 = vpack.c.bf16 %v329_v58, %v328_v57  ;;  %v517_v63 = vpack.c.bf16 %v331_v62, %v330_v61  ;;  %s531_s26 = scalar_lea.vmem %s424_s25, 32  ;;  %p536_p1 = scmp.lt.s32.totalorder %s424_s25, %s424_s25 }
   0x9   :  { %504 = vmatpush3.bf16.msra.mxu0 %v501_v6  ;;  %508 = vmatpush3.bf16.msra.mxu1 %v505_v11  ;;  %p532_p0 = scmp.ne.s32.totalorder %s424_s25, %s531_s26  ;;  %p537_p2 = scmp.lt.s32.totalorder %s531_s26, %s531_s26 }
   0xa   :  { %481 = vmatprep.subr.mxu0 %v230_v13  ;;  %510 = vmatprep.subr.bf16.mxu1 %v509_v14 }
   0xb   :  { %p538_p3 = por %p537_p2, %p536_p1 }
   0xc   :  { %468 = vmatmul.mubr.msk.f32.vlgmr.msra.gmra.mrb[0].mxu0 %vm30_vm0, %v25_v7 }
   0xd   :  { %482 = vmatpush3.msra.mxu0 %v230_v13  ;;  %512 = vmatpush3.bf16.msra.mxu1 %v509_v14  ;;  %p539_p4 = pnand %p538_p3, %p532_p0 }
   0xe   :  { %513 = vmatprep.subr.bf16.mxu1 %v555_v60 }
  0x10   :  { %479 = vmatmul.mubr.msk.f32.vlgmr.msra.gmra.mrb[0].mxu1 %vm30_vm0, %v25_v7 }
  0x11   :  { %515 = vmatpush3.bf16.msra.mxu1 %v514_v59  ;;  %494 = vmatprep.mubr.msk.f32.mxu1 %vm556_vm2, %v557_v0 }
  0x12   :  { %516 = vmatprep.subr.bf16.mxu1 %v555_v60 }
  0x15   :  { %518 = vmatpush3.bf16.msra.mxu1 %v517_v63 }
  0xdf   :  { %v469_v15 = vpop.f32.mrb[0].mxu0 }
  0xe0   :  { %v120_v16 = vsel %vm112_vm1, %v469_v15, -inf  ;;  %v103_v17 = vpop.f32.mrb[1].mxu0 }
  0xe1   :  { %v121_v18 = vrot.slane %v120_v16, 4  ;;  %v113_v19 = vsel %vm112_vm1, %v103_v17, -inf }
  0xe2   :  { %v114_v20 = vrot.slane %v113_v19, 4 }
  0xe3   :  { %v122_v21 = vmax.f32 %v120_v16, %v121_v18  ;;  %v480_v55 = vpop.f32.mrb[0].mxu1 }
  0xe4   :  { %v115_v22 = vmax.f32 %v113_v19, %v114_v20  ;;  %v221_v56 = vpop.f32.mrb[1].mxu1  ;;  %v437_v20 = vld [vmem:[%s672_s5] ss:$0 sm:$0xff] }
  0xe5   :  { %v123_v23 = vrot.slane %v122_v21, 2 }
  0xe6   :  { %v116_v24 = vrot.slane %v115_v22, 2 }
  0xe7   :  { %v124_v25 = vmax.f32 %v122_v21, %v123_v23 }
  0xe8   :  { %v117_v26 = vmax.f32 %v115_v22, %v116_v24 }
  0xe9   :  { %v125_v27 = vrot.slane %v124_v25, 1 }
  0xea   :  { %v118_v28 = vrot.slane %v117_v26, 1 }
  0xeb   :  { %v126_v29 = vmax.f32 %v124_v25, %v125_v27 }
  0xec   :  { %v119_v30 = vmax.f32 %v117_v26, %v118_v28 }
  0xed   :  { %v128_v31 = vsub.f32 %v469_v15, %v126_v29 }
  0xee   :  { %v127_v32 = vsub.f32 %v103_v17, %v119_v30 }
  0xef   :  { %v131_v33 = vmul.f32 1.442695, %v128_v31 }
  0xf0   :  { %v129_v34 = vmul.f32 1.442695, %v127_v32 }
  0xf1   :  { %523 = vpow2.f32 %v131_v33 }
  0xf2   :  { %525 = vpow2.f32 %v129_v34 }
  0xfb   :  { %v524_v35 = vpop.eup %523 }
  0xfc   :  { %v526_v36 = vpop.eup %525  ;;  %v140_v37 = vsel %vm112_vm1, %v524_v35, 0.0 }
  0xfd   :  { %v141_v38 = vrot.slane %v140_v37, 4  ;;  %v133_v39 = vsel %vm112_vm1, %v526_v36, 0.0 }
  0xfe   :  { %v134_v40 = vrot.slane %v133_v39, 4 }
  0xff   :  { %v142_v41 = vadd.f32 %v141_v38, %v140_v37 }
 0x100   :  { %v135_v42 = vadd.f32 %v134_v40, %v133_v39 }
 0x101   :  { %v143_v43 = vrot.slane %v142_v41, 2 }
 0x102   :  { %v136_v44 = vrot.slane %v135_v42, 2 }
 0x103   :  { %v144_v45 = vadd.f32 %v143_v43, %v142_v41 }
 0x104   :  { %v137_v46 = vadd.f32 %v136_v44, %v135_v42 }
 0x105   :  { %v145_v47 = vrot.slane %v144_v45, 1 }
 0x106   :  { %v138_v48 = vrot.slane %v137_v46, 1 }
 0x107   :  { %v146_v49 = vadd.f32 %v145_v47, %v144_v45 }
 0x108   :  { %v139_v50 = vadd.f32 %v138_v48, %v137_v46 }
 0x109   :  { %527 = vrcp.f32 %v146_v49 }
 0x10a   :  { %529 = vrcp.f32 %v139_v50 }
 0x113   :  { %v528_v51 = vpop.eup %527 }
 0x114   :  { %v530_v52 = vpop.eup %529  ;;  %v150_v54 = vmul.f32 %v528_v51, %v524_v35 }
 0x115   :  { %v149_v53 = vmul.f32 %v530_v52, %v526_v36 }
 0x117   :  { %483 = vmatprep.mubr.msk.f32.mxu0 %vm112_vm1, %v149_v53 }
 0x118   :  { %484 = vmatmul.mubr.msk.f32.vlgmr.msra.gmra.mrb[2].mxu0 %vm112_vm1, %v150_v54 }
 0x1eb   :  { %v485_v1 = vpop.f32.mrb[2].mxu0 }
 0x1ec   :  { %v313_v2 = vmul.f32 %v485_v1, %v480_v55  ;;  %v303_v3 = vpop.f32.mrb[3].mxu0 }
 0x1ed   :  { %v312_v4 = vmul.f32 %v303_v3, %v221_v56 }
 0x1ee   :  { %v321_v5 = vsel %vm30_vm0, %v313_v2, 0.0 }
 0x1ef   :  { %v322_v6 = vrot.slane %v321_v5, 4  ;;  %v314_v7 = vsel %vm30_vm0, %v312_v4, 0.0 }
 0x1f0   :  { %v315_v8 = vrot.slane %v314_v7, 4 }
 0x1f1   :  { %v323_v9 = vadd.f32 %v322_v6, %v321_v5 }
 0x1f2   :  { %v316_v10 = vadd.f32 %v315_v8, %v314_v7 }
 0x1f3   :  { %v324_v11 = vrot.slane %v323_v9, 2 }
 0x1f4   :  { %v317_v12 = vrot.slane %v316_v10, 2 }
 0x1f5   :  { %v325_v13 = vadd.f32 %v324_v11, %v323_v9 }
 0x1f6   :  { %v318_v14 = vadd.f32 %v317_v12, %v316_v10 }
 0x1f7   :  { %v326_v15 = vrot.slane %v325_v13, 1 }
 0x1f8   :  { %v319_v16 = vrot.slane %v318_v14, 1 }
 0x1f9   :  { %v327_v17 = vadd.f32 %v326_v15, %v325_v13 }
 0x1fa   :  { %v320_v18 = vadd.f32 %v319_v16, %v318_v14 }
 0x1fc   :  { %v342_v19 = vsel %vm341_vm3, %v327_v17, %v320_v18 }
 0x1fd   :  { %495 = vmatmul.mubr.msk.f32.vlgmr.msra.gmra.mrb[2].mxu1 %vm30_vm0, %v342_v19 }
 0x2d0   :  { %v411_v21 = vpop.f32.mrb[2].mxu1 }
 0x2d1   :  { %v412_v22 = vadd.f32 %v437_v20, %v411_v21  ;;  %v496_v23 = vpop.f32.mrb[3].mxu1 }
 0x2d3   :  { %416 = vst.msk [vmem:[#allocation2] sm:$0x3] %vm415_vm4, %v412_v22 }
 0x2d4   :  { %542 = shalt.err (!%p539_p4)
}
 0x2d5   :  { %s543_s29 = scalar_lea.hbm %s673_s6, 32 }
 0x2d6   :  { %p544_p5 = scmp.ne.s32.totalorder %s673_s6, %s543_s29  ;;  %p547_p6 = scmp.lt.u32.totalorder %s543_s29, %s673_s6 }
 0x2d8   :  { %p549_p7 = pnand %p547_p6, %p544_p5 }
 0x2da   :  { %552 = shalt.err (!%p549_p7)
}
 0x2db   :  { %426 = dma.vmem_to_hbm [thread:$0]  %s424_s25, 32, %s673_s6, [#allocation3]  }
 0x2dc   :  { %553 = dma.done.wait [#allocation3], 32  }
 0x2dd   :  { %554 = vsyncadd [#allocation3], 4294967264 }
 0x2de   :  { %430 = vsyncpa [#allocation3], 1 }

</bundles_post_ra>
